<compile_context>
chip_gen: v7x
topology: tpu7x:2x2x1
jax: 0.10.0
libtpu: 0.0.40
codegen_flags: <defaults>
</compile_context>

<pallas_src>
import functools

import jax
import jax.numpy as jnp
from jax.experimental import pallas as pl
from jax.experimental.pallas import tpu as pltpu


# ---------------------------------------------------------------------------
# Kernels
# ---------------------------------------------------------------------------

def _adapter_kernel(x_ref, wd_ref, bd_ref, wu_ref, bu_ref, out_ref, *, add_residual):
    """Fused down-proj -> ReLU -> up-proj (+bias) [+ residual == x] on one row tile."""
    x = x_ref[...]                                   # (tm, D), native dtype
    # MXU matmul, native operand dtype, f32 accumulation.
    down = jnp.dot(x, wd_ref[...], preferred_element_type=jnp.float32)
    down = jnp.maximum(down + bd_ref[...], 0.0)      # biases already f32
    # dropout p=0.0 (eval) -> identity
    up = jnp.dot(down.astype(wu_ref.dtype), wu_ref[...],
                 preferred_element_type=jnp.float32)
    up = up + bu_ref[...]
    if add_residual:
        up = up + x.astype(jnp.float32)              # residual is x; no second DMA
    out_ref[...] = up.astype(out_ref.dtype)


def _adapter_kernel_sep_res(x_ref, res_ref, wd_ref, bd_ref, wu_ref, bu_ref, out_ref):
    """Variant for an explicit residual tensor different from x."""
    x = x_ref[...]
    down = jnp.dot(x, wd_ref[...], preferred_element_type=jnp.float32)
    down = jnp.maximum(down + bd_ref[...], 0.0)
    up = jnp.dot(down.astype(wu_ref.dtype), wu_ref[...],
                 preferred_element_type=jnp.float32)
    up = up + bu_ref[...] + res_ref[...].astype(jnp.float32)
    out_ref[...] = up.astype(out_ref.dtype)


# ---------------------------------------------------------------------------
# Hardware query / tile selection
# ---------------------------------------------------------------------------

@functools.lru_cache(maxsize=1)
def _vmem_capacity_bytes():
    """Physical per-core VMEM; fall back to the smallest (v7x-like) if unknown."""
    try:
        return int(pltpu.get_tpu_info().vmem_capacity_bytes)
    except Exception:
        return 64 << 20


def _sublane_granule(itemsize):
    # NOTE: v7x's MXU has no integer datapath (bf16/fp8 only); an int8 x/weight
    # path that lowers on v5e/v6e will not on v7x — dequantize to bf16 first.
    return {4: 8, 2: 16, 1: 32}.get(itemsize, 8)


def _pick_row_tile(n_rows, embed_dim, bottleneck, itemsize, separate_residual,
                   *, budget, cap_rows, prefer_even_steps):
    """Pick a row tile that keeps pipelined VMEM usage modest and the MXU busy."""
    sublane = _sublane_granule(itemsize)
    if n_rows <= sublane:
        return n_rows

    # Weights + f32 biases are single-buffered (pl.Buffered(1), constant index map).
    weight_bytes = (2 * embed_dim * bottleneck * itemsize
                    + 4 * (embed_dim + bottleneck))
    # Per-row pipelined VMEM: x/(res)/out double-buffered, plus the f32 'down'
    # intermediate and the f32 'up' intermediate (+ one epilogue temp).
    per_row = ((3 if separate_residual else 2) * 2 * embed_dim * itemsize
               + 4 * bottleneck
               + 2 * 4 * embed_dim)
    cap = max((budget - weight_bytes) // per_row, sublane)
    target = int(min(cap_rows, cap, n_rows))

    def _search(tgt, require_even):
        # Prefer an exact divisor of n_rows that is a multiple of 256 (fills the
        # MXU M dim on v6e/v7x), then 128 (v5e MXU), then the sublane granule.
        for granule in (256, 128, sublane):
            tm = (tgt // granule) * granule
            while tm >= granule:
                if n_rows % tm == 0:
                    steps = n_rows // tm
                    if not require_even or (steps >= 2 and steps % 2 == 0):
                        return tm
                tm -= granule
        return None

    tm = None
    if prefer_even_steps and n_rows >= 512:
        # 2 TensorCores share the parallel grid axis: aim for an even step count.
        tm = _search(min(target, n_rows // 2), require_even=True)
    if tm is None:
        tm = _search(target, require_even=False)
    if tm is None:
        # No nice divisor: take the largest aligned tile; the last grid step is a
        # partial (masked) block.
        tm = max((target // sublane) * sublane, sublane)
    return tm


# ---------------------------------------------------------------------------
# Wrapper
# ---------------------------------------------------------------------------

@functools.partial(jax.jit, static_argnames=("add_residual", "row_tile"))
def adapter_forward(x, w_down, b_down, w_up, b_up, residual=None, *,
                    add_residual=True, row_tile=None):
    """Fused adapter forward.

    x:        (B, S, D)
    w_down:   (D, bottleneck)   (transposed vs. torch Linear.weight)
    b_down:   (bottleneck,)
    w_up:     (bottleneck, D)
    b_up:     (D,)
    residual: (B, S, D) or None (defaults to x, handled without a second DMA)
    """
    B, S, D = x.shape
    Bn = w_down.shape[1]
    itemsize = jnp.dtype(x.dtype).itemsize
    N = B * S

    x2 = x.reshape(N, D)
    bd2 = b_down.astype(jnp.float32).reshape(1, Bn)   # hoisted f32 cast (done once)
    bu2 = b_up.astype(jnp.float32).reshape(1, D)

    separate_residual = add_residual and (residual is not None)

    # Generation-aware VMEM budgeting.
    vmem_cap = _vmem_capacity_bytes()
    small_part = vmem_cap <= (96 << 20)               # v7x-class: 64 MiB VMEM, 2 TCs
    if small_part:
        budget, vmem_limit = 40 << 20, 56 << 20
        cap_rows = 1024 if itemsize <= 2 else 512
    else:                                             # v5e / v6e: 128 MiB VMEM
        budget, vmem_limit = 80 << 20, 96 << 20
        cap_rows = 2048 if itemsize <= 2 else 1024

    tm = row_tile if row_tile is not None else _pick_row_tile(
        N, D, Bn, itemsize, separate_residual,
        budget=budget, cap_rows=cap_rows, prefer_even_steps=small_part)
    sublane = _sublane_granule(itemsize)
    assert tm == N or tm % sublane == 0, (
        f"row tile {tm} must be the full row count or a multiple of the "
        f"{sublane}-row sublane granule for dtype {x.dtype}")

    grid = (pl.cdiv(N, tm),)

    row_spec = pl.BlockSpec((tm, D), lambda i: (i, 0))
    # Constant index maps -> single-buffer the resident weights/biases.
    resident = pl.Buffered(buffer_count=1)
    weight_specs = [
        pl.BlockSpec((D, Bn), lambda i: (0, 0), pipeline_mode=resident),   # W_down
        pl.BlockSpec((1, Bn), lambda i: (0, 0), pipeline_mode=resident),   # b_down (f32)
        pl.BlockSpec((Bn, D), lambda i: (0, 0), pipeline_mode=resident),   # W_up
        pl.BlockSpec((1, D), lambda i: (0, 0), pipeline_mode=resident),    # b_up (f32)
    ]

    bytes_accessed = ((2 + (1 if separate_residual else 0)) * N * D * itemsize
                      + 2 * D * Bn * itemsize + (Bn + D) * 4)
    cost = pl.CostEstimate(flops=4 * N * D * Bn, transcendentals=0,
                           bytes_accessed=bytes_accessed)

    cparams = pltpu.CompilerParams(
        dimension_semantics=("parallel",),
        vmem_limit_bytes=vmem_limit,
    )

    if separate_residual:
        r2 = residual.reshape(N, D)
        out2 = pl.pallas_call(
            _adapter_kernel_sep_res,
            out_shape=jax.ShapeDtypeStruct((N, D), x.dtype),
            grid_spec=pltpu.PrefetchScalarGridSpec(
                num_scalar_prefetch=0,
                grid=grid,
                in_specs=[row_spec, row_spec] + weight_specs,
                out_specs=row_spec,
            ),
            compiler_params=cparams,
            cost_estimate=cost,
        )(x2, r2, w_down, bd2, w_up, bu2)
    else:
        kernel = functools.partial(_adapter_kernel, add_residual=add_residual)
        out2 = pl.pallas_call(
            kernel,
            out_shape=jax.ShapeDtypeStruct((N, D), x.dtype),
            grid_spec=pltpu.PrefetchScalarGridSpec(
                num_scalar_prefetch=0,
                grid=grid,
                in_specs=[row_spec] + weight_specs,
                out_specs=row_spec,
            ),
            compiler_params=cparams,
            cost_estimate=cost,
        )(x2, w_down, bd2, w_up, bu2)

    return out2.reshape(B, S, D)


# ---------------------------------------------------------------------------
# Params / reference
# ---------------------------------------------------------------------------

def init_adapter_params(key, embed_dim, bottleneck, dtype=jnp.float32):
    """Deterministic 'bert' init: weights ~ N(0, 0.02), biases zero."""
    k1, k2 = jax.random.split(key)
    # torch Linear stores weight as (out, in); we keep the (in, out) transpose so the
    # kernel computes x @ W directly (identical math to x @ weight.T).
    w_down = (0.02 * jax.random.normal(k1, (embed_dim, bottleneck))).astype(dtype)
    b_down = jnp.zeros((bottleneck,), dtype=dtype)
    w_up = (0.02 * jax.random.normal(k2, (bottleneck, embed_dim))).astype(dtype)
    b_up = jnp.zeros((embed_dim,), dtype=dtype)
    return w_down, b_down, w_up, b_up


def adapter_reference(x, w_down, b_down, w_up, b_up, residual=None, add_residual=True):
    res = x if residual is None else residual
    xf = x.astype(jnp.float32)
    down = jnp.maximum(
        jnp.dot(xf, w_down.astype(jnp.float32), precision="highest")
        + b_down.astype(jnp.float32), 0.0)
    up = jnp.dot(down, w_up.astype(jnp.float32), precision="highest") + b_up.astype(jnp.float32)
    out = up + res.astype(jnp.float32) if add_residual else up
    return out.astype(x.dtype)


# ---------------------------------------------------------------------------
# Self-test
# ---------------------------------------------------------------------------

if __name__ == "__main__":
    key = jax.random.PRNGKey(0)
    kx, kr, kp, kp2, kp3 = jax.random.split(key, 5)

    # 1) Default path (residual=None -> reuse x tile, no second DMA).
    batch, seq, embed_dim, bottleneck = 2, 8, 32, 16
    x = jax.random.normal(kx, (batch, seq, embed_dim), dtype=jnp.float32)
    w_down, b_down, w_up, b_up = init_adapter_params(kp, embed_dim, bottleneck)

    out = adapter_forward(x, w_down, b_down, w_up, b_up)
    out = jax.block_until_ready(out)
    ref = adapter_reference(x, w_down, b_down, w_up, b_up)
    assert out.shape == (batch, seq, embed_dim)
    assert jnp.allclose(out, ref, atol=1e-4, rtol=1e-4), "mismatch (default path)"

    # 2) Explicit residual tensor + no-residual variant.
    res = jax.random.normal(kr, (batch, seq, embed_dim), dtype=jnp.float32)
    out_r = jax.block_until_ready(
        adapter_forward(x, w_down, b_down, w_up, b_up, residual=res))
    ref_r = adapter_reference(x, w_down, b_down, w_up, b_up, residual=res)
    assert jnp.allclose(out_r, ref_r, atol=1e-4, rtol=1e-4), "mismatch (residual path)"

    out_nr = jax.block_until_ready(
        adapter_forward(x, w_down, b_down, w_up, b_up, add_residual=False))
    ref_nr = adapter_reference(x, w_down, b_down, w_up, b_up, add_residual=False)
    assert jnp.allclose(out_nr, ref_nr, atol=1e-4, rtol=1e-4), "mismatch (no residual)"

    # 3) bf16 path (MXU consumes bf16 operands; 'down' is re-quantized to bf16
    #    before the second matmul -> compare with looser tolerances).
    xb = x.astype(jnp.bfloat16)
    wdb, bdb, wub, bub = init_adapter_params(kp, embed_dim, bottleneck, dtype=jnp.bfloat16)
    out_b = jax.block_until_ready(adapter_forward(xb, wdb, bdb, wub, bub))
    ref_b = adapter_reference(xb, wdb, bdb, wub, bub)
    assert jnp.allclose(out_b.astype(jnp.float32), ref_b.astype(jnp.float32),
                        atol=3e-2, rtol=3e-2), "mismatch (bf16 path)"

    # 4) Larger shape with an explicit tile exercising a multi-step pipelined grid.
    b2, s2, d2, bn2 = 4, 64, 128, 32
    x2 = jax.random.normal(kx, (b2, s2, d2), dtype=jnp.float32)
    wd2, bd2_, wu2, bu2_ = init_adapter_params(kp2, d2, bn2)
    out2 = jax.block_until_ready(
        adapter_forward(x2, wd2, bd2_, wu2, bu2_, row_tile=64))
    ref2 = adapter_reference(x2, wd2, bd2_, wu2, bu2_)
    assert jnp.allclose(out2, ref2, atol=1e-4, rtol=1e-4), "mismatch (tiled grid)"

    # 5) Auto tile picker on a modestly larger shape (generation-aware budget path).
    b3, s3, d3, bn3 = 2, 256, 256, 64
    x3 = jax.random.normal(kr, (b3, s3, d3), dtype=jnp.float32)
    wd3, bd3_, wu3, bu3_ = init_adapter_params(kp3, d3, bn3)
    out3 = jax.block_until_ready(adapter_forward(x3, wd3, bd3_, wu3, bu3_))
    ref3 = adapter_reference(x3, wd3, bd3_, wu3, bu3_)
    assert jnp.allclose(out3, ref3, atol=1e-4, rtol=1e-4), "mismatch (auto-tiled grid)"

    print("KERNEL_OK")
</pallas_src>

<mosaic_0001>
module attributes {stable_mosaic.version = 11 : i64} {
  func.func @_adapter_kernel(%arg0: i32, %arg1: memref<16x32xf32, #tpu.memory_space<vmem>>, %arg2: memref<32x16xf32, #tpu.memory_space<vmem>>, %arg3: memref<1x16xf32, #tpu.memory_space<vmem>>, %arg4: memref<16x32xf32, #tpu.memory_space<vmem>>, %arg5: memref<1x32xf32, #tpu.memory_space<vmem>>, %arg6: memref<16x32xf32, #tpu.memory_space<vmem>>) attributes {dimension_semantics = [#tpu.dimension_semantics<parallel>], iteration_bounds = array<i64: 1>, scalar_prefetch = 0 : i64, scratch_operands = 0 : i64, tpu.core_type = #tpu.core_type<tc>, window_params = [{transform_indices = @transform_0, window_bounds = array<i64: 16, 32>}, {pipeline_mode = #tpu.pipeline_mode<synchronous>, transform_indices = @transform_1, window_bounds = array<i64: 32, 16>}, {pipeline_mode = #tpu.pipeline_mode<synchronous>, transform_indices = @transform_2, window_bounds = array<i64: 1, 16>}, {pipeline_mode = #tpu.pipeline_mode<synchronous>, transform_indices = @transform_3, window_bounds = array<i64: 16, 32>}, {pipeline_mode = #tpu.pipeline_mode<synchronous>, transform_indices = @transform_4, window_bounds = array<i64: 1, 32>}, {transform_indices = @transform_5, window_bounds = array<i64: 16, 32>}]} {
    %c0 = arith.constant 0 : index
    %c0_0 = arith.constant 0 : index
    %0 = vector.load %arg1[%c0, %c0_0] : memref<16x32xf32, #tpu.memory_space<vmem>>, vector<16x32xf32>
    %c0_1 = arith.constant 0 : index
    %c0_2 = arith.constant 0 : index
    %1 = vector.load %arg2[%c0_1, %c0_2] : memref<32x16xf32, #tpu.memory_space<vmem>>, vector<32x16xf32>
    %cst = arith.constant dense<0.000000e+00> : vector<16x16xf32>
    %2 = tpu.matmul %0, %1, %cst {dimension_numbers = #tpu.dot_dimension_numbers<[1], [0], [0], [1], [0, 0, 1, 1], [], []>} : vector<16x32xf32>, vector<32x16xf32>, vector<16x16xf32> -> vector<16x16xf32>
    %c0_3 = arith.constant 0 : index
    %c0_4 = arith.constant 0 : index
    %3 = vector.load %arg3[%c0_3, %c0_4] : memref<1x16xf32, #tpu.memory_space<vmem>>, vector<1x16xf32>
    %4 = vector.broadcast %3 : vector<1x16xf32> to vector<16x16xf32>
    %5 = arith.addf %2, %4 : vector<16x16xf32>
    %cst_5 = arith.constant 0.000000e+00 : f32
    %6 = vector.broadcast %cst_5 : f32 to vector<16x16xf32>
    %7 = arith.maximumf %5, %6 : vector<16x16xf32>
    %c0_6 = arith.constant 0 : index
    %c0_7 = arith.constant 0 : index
    %8 = vector.load %arg4[%c0_6, %c0_7] : memref<16x32xf32, #tpu.memory_space<vmem>>, vector<16x32xf32>
    %cst_8 = arith.constant dense<0.000000e+00> : vector<16x32xf32>
    %9 = tpu.matmul %7, %8, %cst_8 {dimension_numbers = #tpu.dot_dimension_numbers<[1], [0], [0], [1], [0, 0, 1, 1], [], []>} : vector<16x16xf32>, vector<16x32xf32>, vector<16x32xf32> -> vector<16x32xf32>
    %c0_9 = arith.constant 0 : index
    %c0_10 = arith.constant 0 : index
    %10 = vector.load %arg5[%c0_9, %c0_10] : memref<1x32xf32, #tpu.memory_space<vmem>>, vector<1x32xf32>
    %11 = vector.broadcast %10 : vector<1x32xf32> to vector<16x32xf32>
    %12 = arith.addf %9, %11 : vector<16x32xf32>
    %13 = arith.addf %12, %0 : vector<16x32xf32>
    %c0_11 = arith.constant 0 : index
    %c0_12 = arith.constant 0 : index
    %14 = vector.load %arg6[%c0_11, %c0_12] : memref<16x32xf32, #tpu.memory_space<vmem>>, vector<16x32xf32>
    tpu.vector_store %arg6[%c0_11, %c0_12], %13 {strides = array<i32>} : memref<16x32xf32, #tpu.memory_space<vmem>>, vector<16x32xf32>,
    return
  }
  func.func @transform_0(%arg0: i32) -> (i32, i32) {
    %c0_i32 = arith.constant 0 : i32
    %c0_i32_0 = arith.constant 0 : i32
    return %arg0, %c0_i32 : i32, i32
  }
  func.func @transform_1(%arg0: i32) -> (i32, i32) {
    %c0_i32 = arith.constant 0 : i32
    %c0_i32_0 = arith.constant 0 : i32
    %c0_i32_1 = arith.constant 0 : i32
    return %c0_i32, %c0_i32_0 : i32, i32
  }
  func.func @transform_2(%arg0: i32) -> (i32, i32) {
    %c0_i32 = arith.constant 0 : i32
    %c0_i32_0 = arith.constant 0 : i32
    %c0_i32_1 = arith.constant 0 : i32
    return %c0_i32, %c0_i32_0 : i32, i32
  }
  func.func @transform_3(%arg0: i32) -> (i32, i32) {
    %c0_i32 = arith.constant 0 : i32
    %c0_i32_0 = arith.constant 0 : i32
    %c0_i32_1 = arith.constant 0 : i32
    return %c0_i32, %c0_i32_0 : i32, i32
  }
  func.func @transform_4(%arg0: i32) -> (i32, i32) {
    %c0_i32 = arith.constant 0 : i32
    %c0_i32_0 = arith.constant 0 : i32
    %c0_i32_1 = arith.constant 0 : i32
    return %c0_i32, %c0_i32_0 : i32, i32
  }
  func.func @transform_5(%arg0: i32) -> (i32, i32) {
    %c0_i32 = arith.constant 0 : i32
    %c0_i32_0 = arith.constant 0 : i32
    return %arg0, %c0_i32 : i32, i32
  }
}

</mosaic_0001>

<bundles_post_ra>
// kernel: adapter_forward.1
= control target key start
LH: loop header
LB: loop body
LE: loop exit
PB: predicated region body
PF: predicated region fallthrough
CT: control target
= control target key end

     0   :  { %vm34_vm0 = vcmask 261120   ;;  %s381_s0 = inlined_call_operand.vmem [shape: f32[16,32], index: 0, kind: input, shape index: {}]   ;;  %s382_s1 = inlined_call_operand.vmem [shape: f32[32,16], index: 1, kind: input, shape index: {}]   ;;  %s383_s2 = inlined_call_operand.vmem [shape: f32[1,16], index: 2, kind: input, shape index: {}]   ;;  %s384_s3 = inlined_call_operand.vmem [shape: f32[16,32], index: 3, kind: input, shape index: {}]   ;;  %s385_s4 = inlined_call_operand.vmem [shape: f32[1,32], index: 4, kind: input, shape index: {}]   ;;  %s386_s5 = inlined_call_operand.hbm [shape: f32[16,32], index: 5, kind: output, shape index: {}]  }
   0x1   :  { %v23_v0 = vld [vmem:[%s382_s1] sm:$0xff]  ;;  %v24_v1 = vld [vmem:[%s382_s1 + $0x8] sm:$0xff]  ;;  %v25_v2 = vld [vmem:[%s382_s1 + $0x10] sm:$0xff] }
   0x2   :  { %v263_v3 = vpack.c.bf16 %v24_v1, %v23_v0  ;;  %v26_v4 = vld [vmem:[%s382_s1 + $0x18] sm:$0xff]  ;;  %v21_v5 = vld [vmem:[%s381_s0] sm:$0xff] }
   0x3   :  { %v267_v6 = vpack.c.bf16 %v26_v4, %v25_v2  ;;  %253 = vmatprep.mubr.msk.f32.mxu0 %vm34_vm0, %v21_v5 }
   0x4   :  { %10 = vsyncpa [#allocation3], 0  ;;  %264 = vmatprep.subr.bf16.mxu0 %v263_v3  ;;  %v22_v7 = vld [vmem:[%s381_s0 + $0x8] sm:$0xff]  ;;  %v118_v8 = vld [vmem:[%s384_s3] sm:$0xff]  ;;  %vm127_vm1 = vcmask 130048  }
   0x5   :  { %266 = vmatpush3.bf16.msra.mxu0 %v263_v3  ;;  %v119_v9 = vld [vmem:[%s384_s3 + $0x8] sm:$0xff]  ;;  %v229_v11 = vld [vmem:[%s383_s2] ss:$0 sm:$0xff]  ;;  %s302_s3 = smov [#allocation2]  }
   0x6   :  { %268 = vmatprep.subr.bf16.mxu0 %v267_v6  ;;  %v271_v10 = vpack.c.bf16 %v119_v9, %v118_v8  ;;  %v232_v18 = vld [vmem:[%s385_s4] ss:$0 sm:$0xff]  ;;  %s218_s11 = sshll.u32 %s302_s3, 4  ;;  %s219_s11 = int_to_ptr.vmem [resolvable:$true] %s218_s11 }
   0x7   :  { %s278_s2 = scalar_lea.vmem %s219_s11, 256  ;;  %p283_p1 = scmp.lt.s32.totalorder %s219_s11, %s219_s11 }
   0x8   :  { %272 = vmatprep.subr.bf16.mxu1 %v271_v10  ;;  %p279_p0 = scmp.ne.s32.totalorder %s219_s11, %s278_s2  ;;  %p284_p2 = scmp.lt.s32.totalorder %s278_s2, %s278_s2 }
   0x9   :  { %270 = vmatpush3.bf16.msra.mxu0 %v267_v6  ;;  %274 = vmatpush3.bf16.msra.mxu1 %v271_v10 }
   0xa   :  { %p285_p3 = por %p284_p2, %p283_p1 }
   0xc   :  { %254 = vmatmul.mubr.msk.f32.vlgmr.msra.gmra.mrb[0].mxu0 %vm34_vm0, %v22_v7  ;;  %p286_p4 = pnand %p285_p3, %p279_p0 }
  0xdf   :  { %v255_v12 = vpop.f32.mrb[0].mxu0 }
  0xe0   :  { %v113_v13 = vadd.f32 %v255_v12, %v229_v11  ;;  %v107_v14 = vpop.f32.mrb[1].mxu0 }
  0xe1   :  { %v108_v15 = vadd.f32 %v229_v11, %v107_v14 }
  0xe2   :  { %v117_v17 = vmax.f32 %v113_v13, 0.0 }
  0xe3   :  { %v116_v16 = vmax.f32 %v108_v15, 0.0 }
  0xe5   :  { %260 = vmatprep.mubr.msk.f32.mxu1 %vm127_vm1, %v116_v16 }
  0xe6   :  { %261 = vmatmul.mubr.msk.f32.vlgmr.msra.gmra.mrb[0].mxu1 %vm127_vm1, %v117_v17 }
 0x1b9   :  { %v262_v19 = vpop.f32.mrb[0].mxu1 }
 0x1ba   :  { %v206_v20 = vadd.f32 %v262_v19, %v232_v18  ;;  %v200_v21 = vpop.f32.mrb[1].mxu1 }
 0x1bb   :  { %v201_v22 = vadd.f32 %v232_v18, %v200_v21 }
 0x1bc   :  { %v210_v23 = vadd.f32 %v206_v20, %v22_v7 }
 0x1bd   :  { %v209_v24 = vadd.f32 %v201_v22, %v21_v5 }
 0x1be   :  { %212 = vst.msk [vmem:[#allocation2 + $0x8] sm:$0xff] %vm34_vm0, %v210_v23 }
 0x1bf   :  { %211 = vst.msk [vmem:[#allocation2] sm:$0xff] %vm34_vm0, %v209_v24 }
 0x1c0   :  { %289 = shalt.err (!%p286_p4)
}
 0x1c1   :  { %s290_s13 = scalar_lea.hbm %s386_s5, 256 }
 0x1c2   :  { %p291_p5 = scmp.ne.s32.totalorder %s386_s5, %s290_s13  ;;  %p294_p6 = scmp.lt.u32.totalorder %s290_s13, %s386_s5 }
 0x1c4   :  { %p296_p7 = pnand %p294_p6, %p291_p5 }
 0x1c6   :  { %299 = shalt.err (!%p296_p7)
}
 0x1c7   :  { %s303_s18 = smov 128   ;;  %s304_s19 = smov 8  }
 0x1c8   :  { %224 = dma.vmem_to_hbm [thread:$0]  %s219_s11, 256, %s386_s5, [#allocation3], %s303_s18, %s303_s18, %s304_s19  }
 0x1c9   :  { %300 = dma.done.wait [#allocation3], 256  }
 0x1ca   :  { %301 = vsyncadd [#allocation3], 4294967040 }
 0x1cb   :  { %228 = vsyncpa [#allocation3], 1 }

</bundles_post_ra>
